<compile_context>
chip_gen: v5e
topology: v5e:2x2
jax: 0.10.0
libtpu: 0.0.40
codegen_flags: <defaults>
</compile_context>

<pallas_src>
import math

import jax
import jax.numpy as jnp
from jax.experimental import pallas as pl
from jax.experimental.pallas import tpu as pltpu

IN_FEATURES = 28 * 28
NUM_CLASSES = 10


# ----------------------------- Pallas kernel -------------------------------

def _mlp_fused_kernel(x_ref, w_ref, b_ref, label_ref, logits_ref, loss_ref):
    """logits = x @ w + b ; loss = mean(BCEWithLogits(logits, one_hot(label)))."""
    x = x_ref[...]                                   # (M, K) f32
    w = w_ref[...]                                   # (K, N) f32, pre-transposed
    logits = jnp.dot(x, w, preferred_element_type=jnp.float32) + b_ref[...]
    logits_ref[...] = logits.astype(logits_ref.dtype)

    # one-hot(label) built in-kernel: compare class iota against the labels.
    classes = jax.lax.broadcasted_iota(jnp.int32, logits.shape, 1)   # (M, N)
    onehot = (classes == label_ref[...]).astype(jnp.float32)         # (M, N)

    # numerically stable BCE-with-logits: max(z,0) - z*y + log1p(exp(-|z|))
    per_elem = (jnp.maximum(logits, 0.0) - logits * onehot
                + jnp.log1p(jnp.exp(-jnp.abs(logits))))
    loss_ref[...] = jnp.mean(per_elem)[None, None]


# ------------------------------ forward pass -------------------------------

def mlp_forward(params, x, label):
    """Matches MLP.forward: returns (scalar BCE-with-logits loss, logits)."""
    M = x.shape[0]
    x2d = x.reshape(M, IN_FEATURES).astype(jnp.float32)
    label2d = label.reshape(M, 1).astype(jnp.int32)

    vmem = pl.BlockSpec(memory_space=pltpu.MemorySpace.VMEM)
    logits, loss = pl.pallas_call(
        _mlp_fused_kernel,
        out_shape=(
            jax.ShapeDtypeStruct((M, NUM_CLASSES), jnp.float32),
            jax.ShapeDtypeStruct((1, 1), jnp.float32),
        ),
        in_specs=[vmem, vmem, vmem, vmem],
        out_specs=(vmem, vmem),
    )(x2d, params["w_t"], params["b"], label2d)

    # torch: BCEWithLogits(reduction='mean') is already 0-d; .mean(dim=0) no-op.
    return loss[0, 0], logits


# ------------------------- deterministic parameters ------------------------

def init_params(key):
    """PyTorch nn.Linear default init: uniform(+-1/sqrt(fan_in)).

    The weight is stored PRE-TRANSPOSED as (in_features, out_features) so the
    per-step forward never transposes it at runtime.
    """
    kw, kb = jax.random.split(key)
    bound = 1.0 / math.sqrt(IN_FEATURES)
    w_t = jax.random.uniform(kw, (IN_FEATURES, NUM_CLASSES), jnp.float32,
                             -bound, bound)
    b = jax.random.uniform(kb, (1, NUM_CLASSES), jnp.float32, -bound, bound)
    return {"w_t": w_t, "b": b}


# ----------------------------------- main -----------------------------------

if __name__ == "__main__":
    key = jax.random.PRNGKey(0)
    pkey, xkey, lkey = jax.random.split(key, 3)

    params = init_params(pkey)
    # Module hard-codes in_features = 28*28, so MNIST-shaped input (N,1,28,28).
    x = jax.random.normal(xkey, (2, 1, 28, 28), dtype=jnp.float32)
    label = jax.random.randint(lkey, (2,), 0, NUM_CLASSES, dtype=jnp.int32)

    loss, logits = jax.jit(mlp_forward)(params, x, label)
    jax.block_until_ready((loss, logits))

    assert logits.shape == (2, NUM_CLASSES) and loss.shape == ()

    # plain-JAX reference check
    ref_logits = jnp.dot(x.reshape(2, -1), params["w_t"],
                         precision=jax.lax.Precision.HIGHEST) + params["b"]
    ref_onehot = jax.nn.one_hot(label, NUM_CLASSES, dtype=jnp.float32)
    ref_per = (jnp.maximum(ref_logits, 0.0) - ref_logits * ref_onehot
               + jnp.log1p(jnp.exp(-jnp.abs(ref_logits))))
    assert jnp.allclose(logits, ref_logits, atol=1e-3, rtol=1e-3)
    assert jnp.allclose(loss, jnp.mean(ref_per), atol=1e-3, rtol=1e-3)

    print("KERNEL_OK")
</pallas_src>

<mosaic_0001>
module attributes {stable_mosaic.version = 11 : i64} {
  func.func @_mlp_fused_kernel(%arg0: memref<2x784xf32, #tpu.memory_space<vmem>>, %arg1: memref<784x10xf32, #tpu.memory_space<vmem>>, %arg2: memref<1x10xf32, #tpu.memory_space<vmem>>, %arg3: memref<2x1xi32, #tpu.memory_space<vmem>>, %arg4: memref<2x10xf32, #tpu.memory_space<vmem>>, %arg5: memref<1x1xf32, #tpu.memory_space<vmem>>) attributes {dimension_semantics = [], scalar_prefetch = 0 : i64, scratch_operands = 0 : i64, tpu.core_type = #tpu.core_type<tc>} {
    %c0 = arith.constant 0 : index
    %c0_0 = arith.constant 0 : index
    %0 = vector.load %arg0[%c0, %c0_0] : memref<2x784xf32, #tpu.memory_space<vmem>>, vector<2x784xf32>
    %c0_1 = arith.constant 0 : index
    %c0_2 = arith.constant 0 : index
    %1 = vector.load %arg1[%c0_1, %c0_2] : memref<784x10xf32, #tpu.memory_space<vmem>>, vector<784x10xf32>
    %cst = arith.constant dense<0.000000e+00> : vector<2x10xf32>
    %2 = tpu.matmul %0, %1, %cst {dimension_numbers = #tpu.dot_dimension_numbers<[1], [0], [0], [1], [0, 0, 1, 1], [], []>} : vector<2x784xf32>, vector<784x10xf32>, vector<2x10xf32> -> vector<2x10xf32>
    %c0_3 = arith.constant 0 : index
    %c0_4 = arith.constant 0 : index
    %3 = vector.load %arg2[%c0_3, %c0_4] : memref<1x10xf32, #tpu.memory_space<vmem>>, vector<1x10xf32>
    %4 = vector.broadcast %3 : vector<1x10xf32> to vector<2x10xf32>
    %5 = arith.addf %2, %4 : vector<2x10xf32>
    %c0_5 = arith.constant 0 : index
    %c0_6 = arith.constant 0 : index
    %6 = vector.load %arg4[%c0_5, %c0_6] : memref<2x10xf32, #tpu.memory_space<vmem>>, vector<2x10xf32>
    tpu.vector_store %arg4[%c0_5, %c0_6], %5 {strides = array<i32>} : memref<2x10xf32, #tpu.memory_space<vmem>>, vector<2x10xf32>,
    %7 = tpu.iota {dimensions = array<i32: 1>} : vector<2x10xi32>
    %c0_7 = arith.constant 0 : index
    %c0_8 = arith.constant 0 : index
    %8 = vector.load %arg3[%c0_7, %c0_8] : memref<2x1xi32, #tpu.memory_space<vmem>>, vector<2x1xi32>
    %9 = vector.broadcast %8 : vector<2x1xi32> to vector<2x10xi32>
    %10 = arith.cmpi eq, %7, %9 : vector<2x10xi32>
    %11 = arith.extui %10 : vector<2x10xi1> to vector<2x10xi32>
    %12 = arith.sitofp %11 : vector<2x10xi32> to vector<2x10xf32>
    %cst_9 = arith.constant 0.000000e+00 : f32
    %13 = vector.broadcast %cst_9 : f32 to vector<2x10xf32>
    %14 = arith.maximumf %5, %13 : vector<2x10xf32>
    %15 = arith.mulf %5, %12 : vector<2x10xf32>
    %16 = arith.subf %14, %15 : vector<2x10xf32>
    %17 = math.absf %5 : vector<2x10xf32>
    %cst_10 = arith.constant 0.000000e+00 : f32
    %18 = vector.broadcast %cst_10 : f32 to vector<2x10xf32>
    %19 = arith.subf %18, %17 : vector<2x10xf32>
    %20 = math.exp %19 : vector<2x10xf32>
    %21 = math.log1p %20 : vector<2x10xf32>
    %22 = arith.addf %16, %21 : vector<2x10xf32>
    %23 = vector.shape_cast %22 : vector<2x10xf32> to vector<1x2x10xf32>
    %cst_11 = arith.constant dense<0.000000e+00> : vector<1xf32>
    %24 = vector.multi_reduction <add>, %23, %cst_11 [1, 2] : vector<1x2x10xf32> to vector<1xf32>
    %25 = vector.shape_cast %24 : vector<1xf32> to vector<1x1x1xf32>
    %26 = vector.extract %25[0, 0, 0] : f32 from vector<1x1x1xf32>
    %cst_12 = arith.constant 2.000000e+01 : f32
    %27 = arith.divf %26, %cst_12 : f32
    %28 = vector.broadcast %27 : f32 to vector<1x1xf32>
    %c0_13 = arith.constant 0 : index
    %c0_14 = arith.constant 0 : index
    %29 = vector.load %arg5[%c0_13, %c0_14] : memref<1x1xf32, #tpu.memory_space<vmem>>, vector<1x1xf32>
    tpu.vector_store %arg5[%c0_13, %c0_14], %28 {strides = array<i32>} : memref<1x1xf32, #tpu.memory_space<vmem>>, vector<1x1xf32>,
    return
  }
}

</mosaic_0001>

<bundles_post_ra>
// kernel: mlp_forward.1
= control target key start
LH: loop header
LB: loop body
LE: loop exit
PB: predicated region body
PF: predicated region fallthrough
CT: control target
= control target key end

     0   :  { %11 = vsyncpa [#allocation3], 0  ;;  %s788_s0 = inlined_call_operand.vmem [shape: f32[2,784], index: 0, kind: input, shape index: {}]   ;;  %s789_s1 = inlined_call_operand.vmem [shape: f32[784,10], index: 1, kind: input, shape index: {}]   ;;  %s790_s2 = inlined_call_operand.vmem [shape: f32[1,10], index: 2, kind: input, shape index: {}]   ;;  %s791_s3 = inlined_call_operand.vmem [shape: s32[2,1], index: 3, kind: input, shape index: {}]   ;;  %s792_s4 = inlined_call_operand.hbm [shape: f32[2,10], index: 4, kind: output, shape index: {0}]   ;;  %s793_s5 = inlined_call_operand.hbm [shape: f32[1,1], index: 5, kind: output, shape index: {1}]  }
   0x1   :  { %v38_v0 = vld [vmem:[%s789_s1 + $0x78] sm:$0xff]  ;;  %v37_v1 = vld [vmem:[%s789_s1 + $0x70] sm:$0xff]  ;;  %v36_v4 = vld [vmem:[%s789_s1 + $0x68] sm:$0xff] }
   0x2   :  { %v54_v2 = vld [vmem:[%s789_s1 + $0xf8] sm:$0xff]  ;;  %146 = vmatpush.msra.mxu0 %v38_v0  ;;  %v53_v3 = vld [vmem:[%s789_s1 + $0xf0] sm:$0xff]  ;;  %v52_v5 = vld [vmem:[%s789_s1 + $0xe8] sm:$0xff] }
   0x3   :  { %166 = vmatpush.msra.mxu1 %v54_v2  ;;  %v35_v6 = vld [vmem:[%s789_s1 + $0x60] sm:$0xff]  ;;  %v34_v8 = vld [vmem:[%s789_s1 + $0x58] sm:$0xff]  ;;  %v33_v10 = vld [vmem:[%s789_s1 + $0x50] sm:$0xff] }
   0x4   :  { %147 = vmatpush.msra.mxu0 %v37_v1  ;;  %v51_v7 = vld [vmem:[%s789_s1 + $0xe0] sm:$0xff]  ;;  %v50_v9 = vld [vmem:[%s789_s1 + $0xd8] sm:$0xff]  ;;  %v49_v12 = vld [vmem:[%s789_s1 + $0xd0] sm:$0xff] }
   0x5   :  { %167 = vmatpush.msra.mxu1 %v53_v3  ;;  %v70_v11 = vld [vmem:[%s789_s1 + $0x178] sm:$0xff]  ;;  %v69_v13 = vld [vmem:[%s789_s1 + $0x170] sm:$0xff]  ;;  %v68_v15 = vld [vmem:[%s789_s1 + $0x168] sm:$0xff] }
   0x6   :  { %148 = vmatpush.msra.mxu0 %v36_v4  ;;  %186 = vmatpush.msra.mxu2 %v70_v11  ;;  %v86_v14 = vld [vmem:[%s789_s1 + $0x1f8] sm:$0xff]  ;;  %v85_v16 = vld [vmem:[%s789_s1 + $0x1f0] sm:$0xff]  ;;  %v32_v17 = vld [vmem:[%s789_s1 + $0x48] sm:$0xff] }
   0x7   :  { %168 = vmatpush.msra.mxu1 %v52_v5  ;;  %v48_v18 = vld [vmem:[%s789_s1 + $0xc8] sm:$0xff]  ;;  %206 = vmatpush.msra.mxu3 %v86_v14  ;;  %v67_v19 = vld [vmem:[%s789_s1 + $0x160] sm:$0xff]  ;;  %v66_v23 = vld [vmem:[%s789_s1 + $0x158] sm:$0xff] }
   0x8   :  { %149 = vmatpush.msra.mxu0 %v35_v6  ;;  %187 = vmatpush.msra.mxu2 %v69_v13  ;;  %v84_v20 = vld [vmem:[%s789_s1 + $0x1e8] sm:$0xff]  ;;  %v31_v21 = vld [vmem:[%s789_s1 + $0x40] sm:$0xff]  ;;  %v30_v25 = vld [vmem:[%s789_s1 + $0x38] sm:$0xff] }
   0x9   :  { %169 = vmatpush.msra.mxu1 %v51_v7  ;;  %v47_v22 = vld [vmem:[%s789_s1 + $0xc0] sm:$0xff]  ;;  %207 = vmatpush.msra.mxu3 %v85_v16  ;;  %v46_v26 = vld [vmem:[%s789_s1 + $0xb8] sm:$0xff]  ;;  %v65_v27 = vld [vmem:[%s789_s1 + $0x150] sm:$0xff] }
   0xa   :  { %150 = vmatpush.msra.mxu0 %v34_v8  ;;  %188 = vmatpush.msra.mxu2 %v68_v15  ;;  %v83_v24 = vld [vmem:[%s789_s1 + $0x1e0] sm:$0xff]  ;;  %v82_v28 = vld [vmem:[%s789_s1 + $0x1d8] sm:$0xff]  ;;  %v29_v29 = vld [vmem:[%s789_s1 + $0x30] sm:$0xff] }
   0xb   :  { %170 = vmatpush.msra.mxu1 %v50_v9  ;;  %208 = vmatpush.msra.mxu3 %v84_v20  ;;  %v45_v30 = vld [vmem:[%s789_s1 + $0xb0] sm:$0xff]  ;;  %v64_v31 = vld [vmem:[%s789_s1 + $0x148] sm:$0xff]  ;;  %v63_v35 = vld [vmem:[%s789_s1 + $0x140] sm:$0xff] }
   0xc   :  { %151 = vmatpush.msra.mxu0 %v33_v10  ;;  %189 = vmatpush.msra.mxu2 %v67_v19  ;;  %v81_v32 = vld [vmem:[%s789_s1 + $0x1d0] sm:$0xff]  ;;  %v28_v33 = vld [vmem:[%s789_s1 + $0x28] sm:$0xff]  ;;  %v27_v37 = vld [vmem:[%s789_s1 + $0x20] sm:$0xff] }
   0xd   :  { %171 = vmatpush.msra.mxu1 %v49_v12  ;;  %209 = vmatpush.msra.mxu3 %v83_v24  ;;  %v44_v34 = vld [vmem:[%s789_s1 + $0xa8] sm:$0xff]  ;;  %v43_v38 = vld [vmem:[%s789_s1 + $0xa0] sm:$0xff]  ;;  %v62_v39 = vld [vmem:[%s789_s1 + $0x138] sm:$0xff] }
   0xe   :  { %152 = vmatpush.msra.mxu0 %v32_v17  ;;  %190 = vmatpush.msra.mxu2 %v66_v23  ;;  %v80_v36 = vld [vmem:[%s789_s1 + $0x1c8] sm:$0xff]  ;;  %v79_v40 = vld [vmem:[%s789_s1 + $0x1c0] sm:$0xff]  ;;  %v26_v41 = vld [vmem:[%s789_s1 + $0x18] sm:$0xff] }
   0xf   :  { %172 = vmatpush.msra.mxu1 %v48_v18  ;;  %210 = vmatpush.msra.mxu3 %v82_v28  ;;  %v42_v42 = vld [vmem:[%s789_s1 + $0x98] sm:$0xff]  ;;  %v61_v43 = vld [vmem:[%s789_s1 + $0x130] sm:$0xff]  ;;  %v60_v47 = vld [vmem:[%s789_s1 + $0x128] sm:$0xff] }
  0x10   :  { %153 = vmatpush.msra.mxu0 %v31_v21  ;;  %191 = vmatpush.msra.mxu2 %v65_v27  ;;  %v78_v44 = vld [vmem:[%s789_s1 + $0x1b8] sm:$0xff]  ;;  %v25_v45 = vld [vmem:[%s789_s1 + $0x10] sm:$0xff]  ;;  %v24_v49 = vld [vmem:[%s789_s1 + $0x8] sm:$0xff] }
  0x11   :  { %173 = vmatpush.msra.mxu1 %v47_v22  ;;  %211 = vmatpush.msra.mxu3 %v81_v32  ;;  %v41_v46 = vld [vmem:[%s789_s1 + $0x90] sm:$0xff]  ;;  %v40_v50 = vld [vmem:[%s789_s1 + $0x88] sm:$0xff]  ;;  %v59_v51 = vld [vmem:[%s789_s1 + $0x120] sm:$0xff] }
  0x12   :  { %154 = vmatpush.msra.mxu0 %v30_v25  ;;  %192 = vmatpush.msra.mxu2 %v64_v31  ;;  %v77_v48 = vld [vmem:[%s789_s1 + $0x1b0] sm:$0xff]  ;;  %v76_v52 = vld [vmem:[%s789_s1 + $0x1a8] sm:$0xff]  ;;  %v23_v53 = vld [vmem:[%s789_s1] sm:$0xff] }
  0x13   :  { %174 = vmatpush.msra.mxu1 %v46_v26  ;;  %212 = vmatpush.msra.mxu3 %v80_v36  ;;  %v39_v54 = vld [vmem:[%s789_s1 + $0x80] sm:$0xff]  ;;  %v102_v56 = vld [vmem:[%s789_s1 + $0x278] sm:$0xff]  ;;  %v101_v60 = vld [vmem:[%s789_s1 + $0x270] sm:$0xff] }
  0x14   :  { %155 = vmatpush.msra.mxu0 %v29_v29  ;;  %193 = vmatpush.msra.mxu2 %v63_v35  ;;  %v21_v55 = vld [vmem:[%s788_s0] sm:$0xff]  ;;  %v118_v57 = vld [vmem:[%s789_s1 + $0x2f8] sm:$0xff]  ;;  %v117_v61 = vld [vmem:[%s789_s1 + $0x2f0] sm:$0xff] }
  0x15   :  { %175 = vmatpush.msra.mxu1 %v45_v30  ;;  %213 = vmatpush.msra.mxu3 %v79_v40  ;;  %127 = vst [vmem:[#allocation1] ss:$4 sm:$0xff] %v21_v55  ;;  %v58_v58 = vld [vmem:[%s789_s1 + $0x118] sm:$0xff]  ;;  %v75_v59 = vld [vmem:[%s789_s1 + $0x1a0] sm:$0xff]  ;;  %v57_v62 = vld [vmem:[%s789_s1 + $0x110] sm:$0xff] }
  0x16   :  { %156 = vmatpush.msra.mxu0 %v28_v33  ;;  %194 = vmatpush.msra.mxu2 %v62_v39  ;;  %v74_v63 = vld [vmem:[%s789_s1 + $0x198] sm:$0xff]  ;;  %v22_v0 = vld [vmem:[%s788_s0 + $0x8] sm:$0x3f]  ;;  %v73_v4 = vld [vmem:[%s789_s1 + $0x190] sm:$0xff] }
  0x17   :  { %176 = vmatpush.msra.mxu1 %v44_v34  ;;  %214 = vmatpush.msra.mxu3 %v78_v44  ;;  %v100_v1 = vld [vmem:[%s789_s1 + $0x268] sm:$0xff]  ;;  %129 = vst [vmem:[#allocation1 + $0x20] ss:$4 sm:$0xff] %v22_v0 }
  0x18   :  { %157 = vmatpush.msra.mxu0 %v27_v37  ;;  %195 = vmatpush.msra.mxu2 %v61_v43  ;;  %v116_v2 = vld [vmem:[%s789_s1 + $0x2e8] sm:$0xff] }
  0x19   :  { %177 = vmatpush.msra.mxu1 %v43_v38  ;;  %215 = vmatpush.msra.mxu3 %v77_v48  ;;  %v56_v3 = vld [vmem:[%s789_s1 + $0x108] sm:$0xff] }
  0x1a   :  { %158 = vmatpush.msra.mxu0 %v26_v41  ;;  %196 = vmatpush.msra.mxu2 %v60_v47 }
  0x1b   :  { %178 = vmatpush.msra.mxu1 %v42_v42  ;;  %216 = vmatpush.msra.mxu3 %v76_v52 }
  0x1c   :  { %159 = vmatpush.msra.mxu0 %v25_v45  ;;  %197 = vmatpush.msra.mxu2 %v59_v51 }
  0x1d   :  { %179 = vmatpush.msra.mxu1 %v41_v46  ;;  %217 = vmatpush.msra.mxu3 %v75_v59 }
  0x1e   :  { %160 = vmatpush.msra.mxu0 %v24_v49  ;;  %198 = vmatpush.msra.mxu2 %v58_v58 }
  0x1f   :  { %180 = vmatpush.msra.mxu1 %v40_v50 }
  0x20   :  { %161 = vmatpush.msra.mxu0 %v23_v53 }
  0x21   :  { %181 = vmatpush.msra.mxu1 %v39_v54 }
  0x22   :  { %226 = vmatpush.msrb.mxu0 %v102_v56 }
  0x23   :  { %246 = vmatpush.msrb.mxu1 %v118_v57 }
  0x24   :  { %227 = vmatpush.msrb.mxu0 %v101_v60 }
  0x25   :  { %247 = vmatpush.msrb.mxu1 %v117_v61 }
  0x26   :  { %12 = vsyncpa [#allocation5], 0  ;;  %v99_v5 = vld [vmem:[%s789_s1 + $0x260] sm:$0xff]  ;;  %199 = vmatpush.msra.mxu2 %v57_v62  ;;  %218 = vmatpush.msra.mxu3 %v74_v63  ;;  %v72_v8 = vld [vmem:[%s789_s1 + $0x188] sm:$0xff]  ;;  %vm143_vm0 = vcmask 130048   ;;  %v439_v30 = vmov 0   ;;  %v288_v63 = vlaneseq }
  0x27   :  { %v115_v6 = vld [vmem:[%s789_s1 + $0x2e0] sm:$0xff]  ;;  %228 = vmatpush.msrb.mxu0 %v100_v1  ;;  %248 = vmatpush.msrb.mxu1 %v116_v2  ;;  %v98_v9 = vld [vmem:[%s789_s1 + $0x258] sm:$0xff]  ;;  %v132_v11 = vld.sshfl [vmem:[#allocation1 + $0x10] sm:$0xff pattern:$0x73625140]  ;;  %vm286_vm1 = vcmask 74752  }
  0x28   :  { %v55_v7 = vld [vmem:[%s789_s1 + $0x100] sm:$0xff]  ;;  %v114_v10 = vld [vmem:[%s789_s1 + $0x2d8] sm:$0xff]  ;;  %200 = vmatpush.msra.mxu2 %v56_v3  ;;  %219 = vmatpush.msra.mxu3 %v73_v4  ;;  %v97_v13 = vld [vmem:[%s789_s1 + $0x250] sm:$0xff]  ;;  %v289_v0 = vand.u32 127, %v288_v63  ;;  %s343_s20 = sshll.u32 %s792_s4, 4  ;;  %s443_s4 = smov [#allocation4]   ;;  %s344_s20 = int_to_ptr.hbm [resolvable:$true] %s343_s20 }
  0x29   :  { %229 = vmatpush.msrb.mxu0 %v99_v5  ;;  %249 = vmatpush.msrb.mxu1 %v115_v6  ;;  %v71_v12 = vld [vmem:[%s789_s1 + $0x180] sm:$0xff]  ;;  %v113_v14 = vld [vmem:[%s789_s1 + $0x2d0] sm:$0xff]  ;;  %v120_v15 = vld [vmem:[%s789_s1 + $0x308] sm:$0xff]  ;;  %v440_v5 = vmov 0.0   ;;  %s352_s21 = sshll.u32 %s443_s4, 4  ;;  %s354_s24 = sshll.u32 %s793_s5, 4  ;;  %s353_s21 = int_to_ptr.vmem [resolvable:$true] %s352_s21  ;;  %s355_s24 = int_to_ptr.hbm [resolvable:$true] %s354_s24 }
  0x2a   :  { %201 = vmatpush.msra.mxu2 %v55_v7  ;;  %220 = vmatpush.msra.mxu3 %v72_v8  ;;  %v130_v16 = vld.sshfl [vmem:[#allocation1] sm:$0xff pattern:$0x73625140]  ;;  %v96_v17 = vld [vmem:[%s789_s1 + $0x248] sm:$0xff]  ;;  %v94_v24 = vld [vmem:[%s789_s1 + $0x238] sm:$0xff]  ;;  %vm334_vm5 = vcmask 0  }
  0x2b   :  { %230 = vmatpush.msrb.mxu0 %v98_v9  ;;  %250 = vmatpush.msrb.mxu1 %v114_v10  ;;  %v112_v18 = vld [vmem:[%s789_s1 + $0x2c8] sm:$0xff]  ;;  %v133_v19 = vld.sshfl [vmem:[#allocation1 + $0x18] sm:$0xff pattern:$0x73625140]  ;;  %v95_v21 = vld [vmem:[%s789_s1 + $0x240] sm:$0xff] }
  0x2c   :  { %202 = vmatmul.f32.vlgmr.msra.gmra.mxu2 %v132_v11  ;;  %221 = vmatpush.msra.mxu3 %v71_v12  ;;  %v131_v20 = vld.sshfl [vmem:[#allocation1 + $0x8] sm:$0xff pattern:$0x73625140]  ;;  %v111_v22 = vld [vmem:[%s789_s1 + $0x2c0] sm:$0xff]  ;;  %v110_v25 = vld [vmem:[%s789_s1 + $0x2b8] sm:$0xff] }
  0x2d   :  { %231 = vmatpush.msrb.mxu0 %v97_v13  ;;  %251 = vmatpush.msrb.mxu1 %v113_v14  ;;  %v119_v23 = vld [vmem:[%s789_s1 + $0x300] sm:$0xff]  ;;  %v136_v26 = vld.sshfl [vmem:[#allocation1 + $0x30] sm:$0xff pattern:$0x73625140]  ;;  %v92_v31 = vld [vmem:[%s789_s1 + $0x228] sm:$0xff] }
  0x2e   :  { %280 = vmatpush.msrb.mxu2 %v120_v15  ;;  %162 = vmatmul.f32.vlgmr.msra.gmra.mxu0 %v130_v16  ;;  %v290_v27 = vld [vmem:[%s791_s3] sm:$0x3]  ;;  %v93_v28 = vld [vmem:[%s789_s1 + $0x230] sm:$0xff]  ;;  %v108_v32 = vld [vmem:[%s789_s1 + $0x2a8] sm:$0xff] }
  0x2f   :  { %232 = vmatpush.msrb.mxu0 %v96_v17  ;;  %252 = vmatpush.msrb.mxu1 %v112_v18  ;;  %v109_v29 = vld [vmem:[%s789_s1 + $0x2b0] sm:$0xff]  ;;  %v91_v33 = vld [vmem:[%s789_s1 + $0x220] sm:$0xff]  ;;  %v90_v35 = vld [vmem:[%s789_s1 + $0x218] sm:$0xff]  ;;  %v442_v18 = vmov 20.0  }
  0x30   :  { %222 = vmatmul.f32.vlgmr.msra.gmra.mxu3 %v133_v19  ;;  %182 = vmatmul.f32.vlgmr.msra.gmra.mxu1 %v131_v20  ;;  %v107_v34 = vld [vmem:[%s789_s1 + $0x2a0] sm:$0xff]  ;;  %v106_v36 = vld [vmem:[%s789_s1 + $0x298] sm:$0xff]  ;;  %v89_v37 = vld [vmem:[%s789_s1 + $0x210] sm:$0xff] }
  0x31   :  { %233 = vmatpush.msrb.mxu0 %v95_v21  ;;  %253 = vmatpush.msrb.mxu1 %v111_v22  ;;  %v105_v38 = vld [vmem:[%s789_s1 + $0x290] sm:$0xff]  ;;  %v88_v39 = vld [vmem:[%s789_s1 + $0x208] sm:$0xff]  ;;  %v87_v41 = vld [vmem:[%s789_s1 + $0x200] sm:$0xff] }
  0x32   :  { %281 = vmatpush.msrb.mxu2 %v119_v23  ;;  %379 = vset.pattern.permute.xlu0 %v439_v30  ;;  %v104_v40 = vld [vmem:[%s789_s1 + $0x288] sm:$0xff]  ;;  %v103_v42 = vld [vmem:[%s789_s1 + $0x280] sm:$0xff]  ;;  %s441_s1 = smov [#allocation2]  }
  0x33   :  { %234 = vmatpush.msrb.mxu0 %v94_v24  ;;  %254 = vmatpush.msrb.mxu1 %v110_v25  ;;  %v134_v43 = vld.sshfl [vmem:[#allocation1 + $0x20] sm:$0xff pattern:$0x73625140]  ;;  %v135_v44 = vld.sshfl [vmem:[#allocation1 + $0x28] sm:$0xff pattern:$0x73625140] }
  0x34   :  { %368 = vmatmul.msk.f32.vlgmr.msrb.gmra.mxu2 %vm143_vm0, %v136_v26  ;;  %292 = vperm.xlu0 %379, %v290_v27   ;;  %v380_v45 = vld [vmem:[%s790_s2] ss:$0 sm:$0xff]  ;;  %s341_s2 = sshll.u32 %s441_s1, 4  ;;  %s342_s2 = int_to_ptr.vmem [resolvable:$true] %s341_s2 }
  0x35   :  { %235 = vmatpush.msrb.mxu0 %v93_v28  ;;  %255 = vmatpush.msrb.mxu1 %v109_v29 }
  0x37   :  { %236 = vmatpush.msrb.mxu0 %v92_v31  ;;  %256 = vmatpush.msrb.mxu1 %v108_v32 }
  0x39   :  { %237 = vmatpush.msrb.mxu0 %v91_v33  ;;  %257 = vmatpush.msrb.mxu1 %v107_v34 }
  0x3b   :  { %238 = vmatpush.msrb.mxu0 %v90_v35  ;;  %258 = vmatpush.msrb.mxu1 %v106_v36 }
  0x3d   :  { %239 = vmatpush.msrb.mxu0 %v89_v37  ;;  %259 = vmatpush.msrb.mxu1 %v105_v38 }
  0x3f   :  { %240 = vmatpush.msrb.mxu0 %v88_v39  ;;  %260 = vmatpush.msrb.mxu1 %v104_v40 }
  0x41   :  { %241 = vmatpush.msrb.mxu0 %v87_v41  ;;  %261 = vmatpush.msrb.mxu1 %v103_v42 }
  0x42   :  { %242 = vmatmul.f32.vlgmr.msrb.gmra.mxu0 %v134_v43  ;;  %262 = vmatmul.f32.vlgmr.msrb.gmra.mxu1 %v135_v44 }
  0xa6   :  { %v293_v1 = vpop.permute.xlu0 %292 }
  0xa7   :  { %vm294_vm2 = vcmp.eq.s32.totalorder %v289_v0, %v293_v1 }
  0xa8   :  { %v369_v6 = vsel %vm294_vm2, 1.0, %v440_v5 }
  0xab   :  { %v163_v46 = vpop.f32.mrf.mxu0 }
  0xac   :  { %v164_v47 = vadd.f32 %v380_v45, %v163_v46 }
  0xad   :  { %v183_v48 = vpop.f32.mrf.mxu1 }
  0xae   :  { %v184_v49 = vadd.f32 %v183_v48, %v164_v47 }
  0xaf   :  { %v203_v50 = vpop.f32.mrf.mxu2 }
  0xb0   :  { %v204_v51 = vadd.f32 %v203_v50, %v184_v49 }
  0xb3   :  { %v223_v52 = vpop.f32.mrf.mxu3 }
  0xb4   :  { %v224_v53 = vadd.f32 %v223_v52, %v204_v51 }
  0xb7   :  { %v283_v57 = vpop.f32.mrf.mxu2 }
  0xbf   :  { %v243_v54 = vpop.f32.mrf.mxu0  ;;  %v263_v55 = vpop.f32.mrf.mxu1 }
  0xc0   :  { %v244_v56 = vadd.f32 %v243_v54, %v224_v53 }
  0xc2   :  { %v264_v58 = vadd.f32 %v263_v55, %v244_v56 }
  0xc4   :  { %v284_v59 = vadd.f32 %v283_v57, %v264_v58 }
  0xc6   :  { %v300_v60 = vand.u32 2147483647, %v284_v59  ;;  %287 = vst.msk [vmem:[#allocation2] sm:$0x3] %vm286_vm1, %v284_v59  ;;  %v297_v8 = vmax.f32 %v284_v59, 0.0  ;;  %v298_v9 = vmul.f32 %v369_v6, %v284_v59 }
  0xc7   :  { %346 = dma.vmem_to_hbm [thread:$0]  %s342_s2, 32, %s344_s20, [#allocation3]  }
  0xc8   :  { %v301_v61 = vsub.f32 0.0, %v300_v60  ;;  %v299_v14 = vsub.f32 %v297_v8, %v298_v9 }
  0xca   :  { %v302_v62 = vmul.f32 1.442695, %v301_v61 }
  0xcc   :  { %381 = vpow2.f32 %v302_v62 }
  0xd2   :  { %v382_v2 = vpop.eup %381 }
  0xd3   :  { %v304_v3 = vadd.f32 1.0, %v382_v2  ;;  %v307_v4 = vmul.f32 -0.5, %v382_v2  ;;  %v310_v10 = vand.u32 2147483647, %v382_v2 }
  0xd5   :  { %383 = vlog2.f32 %v304_v3  ;;  %v308_v7 = vadd.f32 1.0, %v307_v4  ;;  %vm311_vm3 = vcmp.lt.f32.partialorder %v310_v10, 0.0004427343 }
  0xd6   :  { %385 = vrcp.f32 %v442_v18 }
  0xd7   :  { %v309_v13 = vmul.f32 %v382_v2, %v308_v7 }
  0xdb   :  { %v384_v11 = vpop.eup %383 }
  0xdc   :  { %v306_v12 = vmul.f32 0.6931472, %v384_v11  ;;  %v386_v19 = vpop.eup %385 }
  0xdd   :  { %v325_v20 = vmul.f32 20.0, %v386_v19  ;;  %vm329_vm4 = vweird.f32 %v386_v19 }
  0xde   :  { %v312_v15 = vsel %vm311_vm3, %v309_v13, %v306_v12 }
  0xdf   :  { %v313_v16 = vadd.f32 %v312_v15, %v299_v14  ;;  %v326_v21 = vsub.f32 1.0, %v325_v20 }
  0xe1   :  { %v314_v17 = vsel %vm286_vm1, %v313_v16, 0.0  ;;  %v327_v25 = vmul.f32 %v386_v19, %v326_v21 }
  0xe2   :  { %315 = vadd.xlane.f32.xlu0 %v314_v17 }
  0xe3   :  { %v328_v28 = vadd.f32 %v386_v19, %v327_v25 }
  0xe5   :  { %v330_v31 = vsel %vm329_vm4, %v386_v19, %v328_v28 }
 0x155   :  { %v316_v22 = vpop.xlane.xlu0 %315 }
 0x156   :  { %v317_v23 = vrot.slane %v316_v22, 4 }
 0x158   :  { %v318_v24 = vadd.f32 %v317_v23, %v316_v22 }
 0x15a   :  { %v319_v26 = vrot.slane %v318_v24, 2 }
 0x15c   :  { %v320_v27 = vadd.f32 %v319_v26, %v318_v24 }
 0x15e   :  { %v321_v29 = vrot.slane %v320_v27, 1 }
 0x160   :  { %v322_v30 = vadd.f32 %v321_v29, %v320_v27 }
 0x162   :  { %370 = vpush %v322_v30 }
 0x163   :  { %372 = vpush %v330_v31 }
 0x193   :  { %s371_s22 = spop %370 }
 0x194   :  { %s373_s25 = spop %372 }
 0x195   :  { %s332_s26 = smul.f32 %s373_s25, %s371_s22 }
 0x197   :  { %v333_v32 = vstv %s332_s26 }
 0x198   :  { %335 = vst.msk [vmem:[#allocation4] sm:$0x1] %vm334_vm5, %v333_v32 }
 0x199   :  { %357 = dma.vmem_to_hbm [thread:$0]  %s353_s21, 16, %s355_s24, [#allocation5]  }
 0x19a   :  { %435 = dma.done.wait [#allocation3], 32  }
 0x19b   :  { %436 = vsyncadd [#allocation3], 4294967264 }
 0x19c   :  { %437 = dma.done.wait [#allocation5], 16  }
 0x19d   :  { %438 = vsyncadd [#allocation5], 4294967280 }
 0x19e   :  { %366 = vsyncpa [#allocation3], 1 }
 0x19f   :  { %367 = vsyncpa [#allocation5], 1 }

</bundles_post_ra>
